<compile_context>
chip_gen: v6e
topology: v6e:2x2x1
jax: 0.10.0
libtpu: 0.0.40
codegen_flags: <defaults>
</compile_context>

<pallas_src>
import math
import functools

import jax
import jax.numpy as jnp
from jax.experimental import pallas as pl
from jax.experimental.pallas import tpu as pltpu


NEG_INF = -1e30                      # finite "-inf": no NaN even for fully-masked rows
_VMEM_LIMIT = 48 * 1024 * 1024       # > v6e 32 MiB scoped default, < v7x 64 MiB physical


def _pick_tile(dim, cap, align=8):
    """Largest tile <= cap dividing dim (prefer multiples of `align`)."""
    if dim <= cap:
        return dim
    best = None
    for t in range(cap, 0, -1):
        if dim % t == 0:
            if t % align == 0:
                return t
            if best is None:
                best = t
    return best if best is not None else dim


# ---------------------------------------------------------------------------
# Tiled, pipelined "grouped" matmul:  a (M, K) @ b (G, K, N) -> (G, M, N)
#   G=3 gives the q/k/v projections in separate slabs (no activation chunking),
#   G=1 gives the output projection.
# ---------------------------------------------------------------------------
def _grouped_matmul_kernel(a_ref, b_ref, o_ref, acc_ref):
    @pl.when(pl.program_id(3) == 0)
    def _init():
        acc_ref[...] = jnp.zeros_like(acc_ref)

    acc_ref[...] += jax.lax.dot_general(
        a_ref[...], b_ref[0],
        (((1,), (0,)), ((), ())),
        preferred_element_type=jnp.float32,
    )

    @pl.when(pl.program_id(3) == pl.num_programs(3) - 1)
    def _finalize():
        o_ref[0] = acc_ref[...].astype(o_ref.dtype)


def grouped_matmul(a, b, *, out_dtype=None, tm=256, tn=256, tk=512):
    M, K = a.shape
    G, K2, N = b.shape
    assert K == K2
    tm = _pick_tile(M, tm, align=8)
    tn = _pick_tile(N, tn, align=128)
    tk = _pick_tile(K, tk, align=128)
    out_dtype = out_dtype or a.dtype
    grid = (G, M // tm, N // tn, K // tk)
    return pl.pallas_call(
        _grouped_matmul_kernel,
        out_shape=jax.ShapeDtypeStruct((G, M, N), out_dtype),
        grid=grid,
        in_specs=[
            pl.BlockSpec((tm, tk), lambda g, i, j, k: (i, k)),
            pl.BlockSpec((1, tk, tn), lambda g, i, j, k: (g, k, j)),
        ],
        out_specs=pl.BlockSpec((1, tm, tn), lambda g, i, j, k: (g, i, j)),
        scratch_shapes=[pltpu.VMEM((tm, tn), jnp.float32)],
        compiler_params=pltpu.CompilerParams(
            dimension_semantics=("parallel", "parallel", "parallel", "arbitrary"),
            vmem_limit_bytes=_VMEM_LIMIT,
        ),
    )(a, b)


# ---------------------------------------------------------------------------
# Flash-style attention in packed 'b n (h d)' layout.
#   grid = (B, Nq_tiles, Nk_tiles); online-softmax state (m, l, acc) in VMEM
#   scratch persists across the kv ("arbitrary") axis.
# ---------------------------------------------------------------------------
def _flash_attn_kernel(q_ref, k_ref, v_ref, cq_ref, sq_ref, ck_ref, sk_ref,
                       bias_ref, o_ref, acc_sc, m_sc, l_sc,
                       *, heads, head_dim, compute_dtype):
    H, D = heads, head_dim
    Dh = D // 2
    ki = pl.program_id(2)

    @pl.when(ki == 0)
    def _init():
        m_sc[...] = jnp.full(m_sc.shape, NEG_INF, dtype=m_sc.dtype)
        l_sc[...] = jnp.zeros_like(l_sc)
        acc_sc[...] = jnp.zeros_like(acc_sc)

    # (tq, H*D) / (tk, H*D) tiles; rotary + softmax stats in f32, matmuls in
    # compute_dtype with f32 accumulation.
    q_all = q_ref[0, 0].astype(jnp.float32)
    k_all = k_ref[0, 0].astype(jnp.float32)
    v_all = v_ref[0, 0]
    cq = cq_ref[...]           # (tq, D)  cos * 1/sqrt(D)      (scale folded in)
    sq = sq_ref[...]           # (tq, D)  signed sin * 1/sqrt(D)
    ck = ck_ref[...]           # (tk, D)  cos
    sk = sk_ref[...]           # (tk, D)  signed sin
    bias = bias_ref[...]       # (1, tk)  additive mask bias (0 / NEG_INF)

    def rot_half(t):           # (x1, x2) -> (x2, x1); sign folded into sin table
        return jnp.concatenate([t[:, Dh:], t[:, :Dh]], axis=-1)

    for h in range(H):         # static unroll; lane-slices of the packed tile
        sl = slice(h * D, (h + 1) * D)
        qh = q_all[:, sl]
        kh = k_all[:, sl]
        vh = v_all[:, sl]

        # rotary embedding (1/sqrt(D) already folded into cq/sq)
        qh = qh * cq + rot_half(qh) * sq
        kh = kh * ck + rot_half(kh) * sk

        # scores: contract last axes directly (no transpose), f32 accumulation
        s = jax.lax.dot_general(
            qh.astype(compute_dtype), kh.astype(compute_dtype),
            (((1,), (1,)), ((), ())),
            preferred_element_type=jnp.float32,
        )
        s = s + bias                                   # (tq, tk)

        m_prev = m_sc[h]                               # (tq, 1)
        m_new = jnp.maximum(m_prev, jnp.max(s, axis=-1, keepdims=True))
        alpha = jnp.exp(m_prev - m_new)
        p = jnp.exp(s - m_new)
        l_sc[h] = alpha * l_sc[h] + jnp.sum(p, axis=-1, keepdims=True)
        acc_sc[h] = alpha * acc_sc[h] + jnp.dot(
            p.astype(compute_dtype), vh, preferred_element_type=jnp.float32)
        m_sc[h] = m_new

    @pl.when(ki == pl.num_programs(2) - 1)
    def _finalize():
        outs = []
        for h in range(H):
            inv = pl.reciprocal(l_sc[h], approx=True)  # EUP, off the VALU slot
            outs.append(acc_sc[h] * inv)
        # single lane-dense (tq, H*D) store in 'b n (h d)' layout
        o_ref[0] = jnp.concatenate(outs, axis=-1).astype(o_ref.dtype)


def flash_attention(qkv3, cos_q, sin_q, cos_k, sin_k, bias, *, heads,
                    compute_dtype, tq=256, tk=256):
    _, B, N, C = qkv3.shape
    D = C // heads
    tq = _pick_tile(N, tq, align=8)
    tk = _pick_tile(N, tk, align=8)
    grid = (B, N // tq, N // tk)

    kernel = functools.partial(_flash_attn_kernel, heads=heads, head_dim=D,
                               compute_dtype=compute_dtype)

    return pl.pallas_call(
        kernel,
        out_shape=jax.ShapeDtypeStruct((B, N, C), compute_dtype),
        grid=grid,
        in_specs=[
            # q / k / v selected straight out of the (3, B, N, C) projection
            pl.BlockSpec((1, 1, tq, C), lambda b, qi, ki: (0, b, qi, 0)),
            pl.BlockSpec((1, 1, tk, C), lambda b, qi, ki: (1, b, ki, 0)),
            pl.BlockSpec((1, 1, tk, C), lambda b, qi, ki: (2, b, ki, 0)),
            pl.BlockSpec((tq, D), lambda b, qi, ki: (qi, 0)),
            pl.BlockSpec((tq, D), lambda b, qi, ki: (qi, 0)),
            pl.BlockSpec((tk, D), lambda b, qi, ki: (ki, 0)),
            pl.BlockSpec((tk, D), lambda b, qi, ki: (ki, 0)),
            pl.BlockSpec((1, tk), lambda b, qi, ki: (b, ki)),
        ],
        out_specs=pl.BlockSpec((1, tq, C), lambda b, qi, ki: (b, qi, 0)),
        scratch_shapes=[
            pltpu.VMEM((heads, tq, D), jnp.float32),   # acc
            pltpu.VMEM((heads, tq, 1), jnp.float32),   # m (running max)
            pltpu.VMEM((heads, tq, 1), jnp.float32),   # l (running denom)
        ],
        compiler_params=pltpu.CompilerParams(
            dimension_semantics=("parallel", "parallel", "arbitrary"),
            vmem_limit_bytes=_VMEM_LIMIT,
        ),
    )(qkv3, qkv3, qkv3, cos_q, sin_q, cos_k, sin_k, bias)


# ---------------------------------------------------------------------------
# Full module forward.
# ---------------------------------------------------------------------------
def attention_forward(x, w_qkv, w_out, rotary_pos, mask, heads,
                      compute_dtype=jnp.bfloat16):
    B, N, C = x.shape
    D = C // heads
    assert heads * D == C
    cd = compute_dtype

    # qkv projection: W_qkv (C, 3C) reorganised to (3, C, C) so q/k/v land in
    # separate leading slabs -> no activation-sized chunk / head transposes.
    w3 = w_qkv.reshape(C, 3, C).transpose(1, 0, 2)
    qkv3 = grouped_matmul(x.reshape(B * N, C).astype(cd), w3.astype(cd),
                          out_dtype=cd)
    qkv3 = qkv3.reshape(3, B, N, C)

    # rotary tables: transcendentals computed once here (not per grid step);
    # rotate_half sign and 1/sqrt(D) scale folded into the tables.
    scale = 1.0 / math.sqrt(D)
    cos = jnp.cos(rotary_pos).astype(jnp.float32)            # (N, D)
    sin = jnp.sin(rotary_pos).astype(jnp.float32)
    Dh = D // 2
    sin_signed = jnp.concatenate([-sin[:, :Dh], sin[:, Dh:]], axis=-1)
    cos_q = cos * scale
    sin_q = sin_signed * scale
    cos_k = cos
    sin_k = sin_signed

    # additive mask bias (0 keep / NEG_INF masked)
    if mask is None:
        bias = jnp.zeros((B, N), jnp.float32)
    else:
        bias = jnp.where(mask, 0.0, NEG_INF).astype(jnp.float32)

    attn = flash_attention(qkv3, cos_q, sin_q, cos_k, sin_k, bias,
                           heads=heads, compute_dtype=cd)     # (B, N, C)

    # output projection (G=1 grouped matmul), final result in x.dtype
    out = grouped_matmul(attn.reshape(B * N, C), w_out.astype(cd)[None],
                         out_dtype=x.dtype)
    return out[0].reshape(B, N, C)
    # TODO(synk): training-mode dropout (dropout_p > 0) is not implemented;
    # the forward matches eval mode / dropout_p=0 like the reference SDPA call.


# ---------------------------------------------------------------------------
# Pure-JAX reference for correctness checking.
# ---------------------------------------------------------------------------
def reference_forward(x, w_qkv, w_out, rotary_pos, mask, heads):
    B, N, C = x.shape
    D = C // heads
    qkv = x @ w_qkv

    def split_heads(t):
        return t.reshape(B, N, heads, D).transpose(0, 2, 1, 3)

    q = split_heads(qkv[..., :C])
    k = split_heads(qkv[..., C:2 * C])
    v = split_heads(qkv[..., 2 * C:])

    def rotate_half(t):
        t1, t2 = jnp.split(t, 2, axis=-1)
        return jnp.concatenate([-t2, t1], axis=-1)

    cos = jnp.cos(rotary_pos)
    sin = jnp.sin(rotary_pos)
    q = q * cos + rotate_half(q) * sin
    k = k * cos + rotate_half(k) * sin

    s = jnp.einsum("bhqd,bhkd->bhqk", q, k) / math.sqrt(D)
    s = jnp.where(mask[:, None, None, :], s, -jnp.inf)
    p = jax.nn.softmax(s, axis=-1)
    o = jnp.einsum("bhqk,bhkd->bhqd", p, v)
    o = o.transpose(0, 2, 1, 3).reshape(B, N, C)
    return o @ w_out


if __name__ == "__main__":
    B, N, heads, hidden = 2, 8, 4, 32
    D = hidden // heads

    key = jax.random.PRNGKey(0)
    kx, kw1, kw2 = jax.random.split(key, 3)

    x = jax.random.normal(kx, (B, N, hidden), dtype=jnp.float32)
    w_qkv = jax.random.normal(kw1, (hidden, 3 * hidden), dtype=jnp.float32) / math.sqrt(hidden)
    w_out = jax.random.normal(kw2, (hidden, hidden), dtype=jnp.float32) / math.sqrt(hidden)

    # rotary positional embedding table (N, D)
    inv_freq = 1.0 / (10000.0 ** (jnp.arange(0, D, 2, dtype=jnp.float32) / D))
    t = jnp.arange(N, dtype=jnp.float32)
    freqs = jnp.einsum("n,f->nf", t, inv_freq)
    rotary_pos = jnp.concatenate([freqs, freqs], axis=-1)

    # boolean key mask (B, N): mask out the last two key positions
    mask = jnp.ones((B, N), dtype=bool).at[:, -2:].set(False)

    ref = reference_forward(x, w_qkv, w_out, rotary_pos, mask, heads)

    # 1) f32 compute path: tight functional check of the kernel logic
    #    (only deviations: online softmax reordering + approx reciprocal).
    out_f32 = attention_forward(x, w_qkv, w_out, rotary_pos, mask, heads,
                                compute_dtype=jnp.float32)
    out_f32 = jax.block_until_ready(out_f32)
    assert out_f32.shape == (B, N, hidden)
    assert jnp.allclose(out_f32, ref, atol=5e-3, rtol=5e-3), "f32 path mismatch vs reference"

    # 2) bf16 MXU path (default / production): bf16-level tolerance.
    out_bf16 = attention_forward(x, w_qkv, w_out, rotary_pos, mask, heads)
    out_bf16 = jax.block_until_ready(out_bf16)
    assert out_bf16.shape == (B, N, hidden)
    assert jnp.allclose(out_bf16, ref, atol=1e-1, rtol=1e-1), "bf16 path mismatch vs reference"

    print("KERNEL_OK")
</pallas_src>

<mosaic_0001>
module attributes {stable_mosaic.version = 11 : i64} {
  func.func @_grouped_matmul_kernel(%arg0: i32, %arg1: i32, %arg2: i32, %arg3: i32, %arg4: memref<16x32xf32, #tpu.memory_space<vmem>>, %arg5: memref<1x32x32xf32, #tpu.memory_space<vmem>>, %arg6: memref<1x16x32xf32, #tpu.memory_space<vmem>>, %arg7: memref<16x32xf32, #tpu.memory_space<vmem>>) attributes {dimension_semantics = [#tpu.dimension_semantics<parallel>, #tpu.dimension_semantics<parallel>, #tpu.dimension_semantics<parallel>, #tpu.dimension_semantics<arbitrary>], iteration_bounds = array<i64: 3, 1, 1, 1>, scalar_prefetch = 0 : i64, scratch_operands = 1 : i64, tpu.core_type = #tpu.core_type<tc>, window_params = [{transform_indices = @transform_0, window_bounds = array<i64: 16, 32>}, {transform_indices = @transform_1, window_bounds = array<i64: 1, 32, 32>}, {transform_indices = @transform_2, window_bounds = array<i64: 1, 16, 32>}]} {
    %c0_i32 = arith.constant 0 : i32
    %0 = arith.cmpi eq, %arg3, %c0_i32 : i32
    %1 = arith.extui %0 : i1 to i32
    %c0_i32_0 = arith.constant 0 : i32
    %2 = arith.cmpi ne, %1, %c0_i32_0 : i32
    scf.if %2 {
      %cst_11 = arith.constant 0.000000e+00 : f32
      %13 = vector.broadcast %cst_11 : f32 to vector<16x32xf32>
      %c0_12 = arith.constant 0 : index
      %c0_13 = arith.constant 0 : index
      %14 = vector.load %arg7[%c0_12, %c0_13] : memref<16x32xf32, #tpu.memory_space<vmem>>, vector<16x32xf32>
      tpu.vector_store %arg7[%c0_12, %c0_13], %13 {strides = array<i32>} : memref<16x32xf32, #tpu.memory_space<vmem>>, vector<16x32xf32>,
    } else {
    }
    %c0 = arith.constant 0 : index
    %c0_1 = arith.constant 0 : index
    %3 = vector.load %arg7[%c0, %c0_1] : memref<16x32xf32, #tpu.memory_space<vmem>>, vector<16x32xf32>
    %c0_2 = arith.constant 0 : index
    %c0_3 = arith.constant 0 : index
    %4 = vector.load %arg4[%c0_2, %c0_3] : memref<16x32xf32, #tpu.memory_space<vmem>>, vector<16x32xf32>
    %c0_4 = arith.constant 0 : index
    %c0_5 = arith.constant 0 : index
    %c0_6 = arith.constant 0 : index
    %5 = vector.load %arg5[%c0_4, %c0_5, %c0_6] : memref<1x32x32xf32, #tpu.memory_space<vmem>>, vector<1x32x32xf32>
    %6 = vector.shape_cast %5 : vector<1x32x32xf32> to vector<32x32xf32>
    %cst = arith.constant dense<0.000000e+00> : vector<16x32xf32>
    %7 = tpu.matmul %4, %6, %cst {dimension_numbers = #tpu.dot_dimension_numbers<[1], [0], [0], [1], [0, 0, 1, 1], [], []>} : vector<16x32xf32>, vector<32x32xf32>, vector<16x32xf32> -> vector<16x32xf32>
    %8 = arith.addf %3, %7 : vector<16x32xf32>
    %c0_7 = arith.constant 0 : index
    %c0_8 = arith.constant 0 : index
    %9 = vector.load %arg7[%c0_7, %c0_8] : memref<16x32xf32, #tpu.memory_space<vmem>>, vector<16x32xf32>
    tpu.vector_store %arg7[%c0_7, %c0_8], %8 {strides = array<i32>} : memref<16x32xf32, #tpu.memory_space<vmem>>, vector<16x32xf32>,
    %c0_i32_9 = arith.constant 0 : i32
    %10 = arith.cmpi eq, %arg3, %c0_i32_9 : i32
    %11 = arith.extui %10 : i1 to i32
    %c0_i32_10 = arith.constant 0 : i32
    %12 = arith.cmpi ne, %11, %c0_i32_10 : i32
    scf.if %12 {
      %c0_11 = arith.constant 0 : index
      %c0_12 = arith.constant 0 : index
      %13 = vector.load %arg7[%c0_11, %c0_12] : memref<16x32xf32, #tpu.memory_space<vmem>>, vector<16x32xf32>
      %c0_13 = arith.constant 0 : index
      %c0_14 = arith.constant 0 : index
      %c0_15 = arith.constant 0 : index
      %14 = vector.load %arg6[%c0_13, %c0_14, %c0_15] : memref<1x16x32xf32, #tpu.memory_space<vmem>>, vector<1x16x32xf32>
      %15 = vector.shape_cast %14 : vector<1x16x32xf32> to vector<16x32xf32>
      %16 = vector.shape_cast %13 : vector<16x32xf32> to vector<1x16x32xf32>
      tpu.vector_store %arg6[%c0_13, %c0_14, %c0_15], %16 {strides = array<i32>} : memref<1x16x32xf32, #tpu.memory_space<vmem>>, vector<1x16x32xf32>,
    } else {
    }
    return
  }
  func.func @transform_0(%arg0: i32, %arg1: i32, %arg2: i32, %arg3: i32) -> (i32, i32) {
    %c0_i32 = arith.constant 0 : i32
    return %arg1, %arg3 : i32, i32
  }
  func.func @transform_1(%arg0: i32, %arg1: i32, %arg2: i32, %arg3: i32) -> (i32, i32, i32) {
    %c0_i32 = arith.constant 0 : i32
    return %arg0, %arg3, %arg2 : i32, i32, i32
  }
  func.func @transform_2(%arg0: i32, %arg1: i32, %arg2: i32, %arg3: i32) -> (i32, i32, i32) {
    %c0_i32 = arith.constant 0 : i32
    return %arg0, %arg1, %arg2 : i32, i32, i32
  }
}

</mosaic_0001>

<bundles_post_ra>
// kernel: tpu_custom_call.1
= control target key start
LH: loop header
LB: loop body
LE: loop exit
PB: predicated region body
PF: predicated region fallthrough
CT: control target
= control target key end

     0   :  { %7 = vsyncpa [#allocation4], 0  ;;  %s937_s0 = inlined_call_operand.hbm [shape: f32[16,32], index: 0, kind: input, shape index: {}]   ;;  %s938_s1 = inlined_call_operand.hbm [shape: f32[3,32,32], index: 1, kind: input, shape index: {}]   ;;  %s939_s2 = inlined_call_operand.hbm [shape: f32[3,16,32], index: 2, kind: output, shape index: {}]  }
   0x1   :  { %8 = vsyncpa [#allocation7], 0 }
   0x2   :  { %10 = vsyncpa [#allocation7 + $0x1], 0 }
   0x3   :  { %11 = vsyncpa [#allocation5], 0 }
   0x4   :  { %13 = vsyncpa [#allocation5 + $0x1], 0  ;;  %s743_s9 = smov 0   ;;  %s745_s10 = smov 0  }
   0x5   :  { %s747_s11 = smov 0   ;;  %s749_s12 = smov 0  }
   0x6   :  { %s751_s13 = smov 0   ;;  %s753_s14 = smov 0  }
   0x7 LB: > { %s464_s15 = sadd.s32 4294967295, %s718_s14   ;;  %s465_s16 = sadd.s32 4294967294, %s718_s14   ;;  %s718_s14 = sphi %s753_s14, %s19_s14   ;;  %s714_s13 = sphi %s751_s13, %s958_s13   ;;  %s710_s12 = sphi %s749_s12, %s957_s12   ;;  %s706_s11 = sphi %s747_s11, %s956_s11   ;;  %s702_s10 = sphi %s745_s10, %s955_s10   ;;  %s698_s9 = sphi %s743_s9, %s954_s9  }
   0x8   : > { %p97_p0 = scmp.ne.s32.totalorder %s702_s10, %s698_s9  ;;  %p777_p1 = scmp.eq.s32.totalorder %s464_s15, 0 }
   0x9   : > { %p781_p2 = scmp.eq.s32.totalorder %s464_s15, 2  ;;  %p131_p3 = scmp.eq.s32.totalorder %s465_s16, 2 }
   0xa   : > { %p787_p4 = por %p777_p1, %p97_p0  ;;  %p466_p5 = scmp.ge.s32.totalorder %s718_s14, 1 }
   0xb   : > { %p792_p6 = por %p131_p3, %p97_p0  ;;  %p138_p7 = scmp.lt.s32.totalorder %s718_s14, 4 }
   0xc   : > { %s720_s22 = smov [#allocation3]   ;;  %s45_s25 = sadd.s32 1, %s714_s13 }
   0xd   : > { %s945_s20 = scalar_select %p792_p6, 1, 0 }
   0xe   : > { %p797_p8 = pnand %p466_p5, %p138_p7  ;;  %s154_s23 = sshll.u32 %s720_s22, 4  ;;  %s155_s23 = int_to_ptr.vmem [resolvable:$true] %s154_s23 }
   0xf   : > { %s591_s26 = scalar_lea.vmem %s155_s23, 256  ;;  %p599_p3 = scmp.lt.s32.totalorder %s155_s23, %s155_s23 }
  0x10   : > { %p510_p9 = pneg %p797_p8  ;;  %p592_p12 = scmp.ne.s32.totalorder %s155_s23, %s591_s26 }
  0x11   : > { %p600_p5 = scmp.lt.s32.totalorder %s591_s26, %s591_s26 }
  0x12   : > { %p805_p10 = pnand %p510_p9, %p777_p1 }
  0x13   : > { %p601_p7 = por %p600_p5, %p599_p3 }
  0x14   : > { %p582_p11 = pneg %p805_p10 }
  0x16   : > { %p594_p13 = pnand %p592_p12, %p582_p11 }
  0x18   : > { %p595_p0 = pneg %p594_p13 }
  0x1a   : > { %p602_p6 = pnand %p601_p7, %p595_p0 }
  0x1c   : > { %605 = shalt.err (!%p602_p6)
}
  0x1d   : > { %s940_s27 = smov 128   ;;  %s722_s28 = smov 8  }
  0x1e   : > { %513 = dma.hbm_to_vmem [thread:$0]  (!%p805_p10), %s937_s0, 256, %s155_s23, [#allocation4], %s940_s27, %s940_s27, %s722_s28  }
  0x1f   : > { %p47_p6 = scmp.ge.s32.totalorder %s45_s25, 3  ;;  %s84_s3 = sadd.s32 1, %s706_s11 }
  0x20   : > { %p91_p9 = scmp.ne.s32.totalorder %s706_s11, %s702_s10  ;;  %p92_p11 = scmp.eq.s32.totalorder %s718_s14, 0 }
  0x21   : > { %s960_s25 = smov (%p47_p6, %s45_s25), 0  ;;  %p523_p0 = scmp.lt.s32.totalorder %s718_s14, 3 }
  0x22   : > { %p826_p12 = por %p92_p11, %p91_p9  ;;  %p832_p13 = por %p781_p2, %p91_p9 }
  0x23   : > { %s77_s6 = ssub.s32 %s714_s13, %s960_s25  ;;  %s168_s7 = sand.u32 1, %s706_s11  }
  0x24   : > { %s949_s5 = scalar_select %p832_p13, 1, 0 }
  0x25   : > { %p82_p10 = scmp.eq.s32.totalorder %s77_s6, 0  ;;  %s469_s8 = sshll.u32 %s168_s7, 5 }
  0x26   : > { %s483_s16 = sshll.u32 %s714_s13, 9  ;;  %s172_s26 = scalar_lea.vmem [#allocation6], %s469_s8 }
  0x27   : > { %s841_s15 = scalar_select %p82_p10, %s706_s11, %s84_s3  }
  0x28   : > { %s181_s24 = scalar_lea.hbm %s938_s1, %s483_s16  ;;  %s182_s29 = sshll.u32 %s172_s26, 4  ;;  %s183_s29 = int_to_ptr.vmem [resolvable:$true] %s182_s29 }
  0x29   : > { %p849_p2 = pnand %p523_p0, %p826_p12  ;;  %s169_s30 = scalar_lea.sflag [#allocation7], %s168_s7 }
  0x2a   : > { %s619_s6 = scalar_lea.vmem %s183_s29, 512  ;;  %s723_s3 = smov [#allocation6]  }
  0x2b   : > { %p608_p3 = pneg %p849_p2  ;;  %p620_p5 = scmp.ne.s32.totalorder %s183_s29, %s619_s6 }
  0x2c   : > { %s624_s27 = sshll.u32 %s723_s3, 4  ;;  %s625_s27 = int_to_ptr.vmem [resolvable:$false] %s624_s27 }
  0x2d   : > { %p622_p7 = pnand %p620_p5, %p608_p3  ;;  %s626_s16 = scalar_lea.vmem %s625_s27, 1024 }
  0x2e   : > { %p627_p9 = scmp.lt.s32.totalorder %s183_s29, %s625_s27  ;;  %p628_p11 = scmp.lt.s32.totalorder %s626_s16, %s619_s6 }
  0x2f   : > { %p623_p6 = pneg %p622_p7 }
  0x30   : > { %p629_p10 = por %p628_p11, %p627_p9 }
  0x32   : > { %p630_p13 = pnand %p629_p10, %p623_p6 }
  0x34   : > { %633 = shalt.err (!%p630_p13)
}
  0x35   : > { %s951_s4 = smov 128   ;;  %194 = sbr.rel (%p797_p8) target bundleno = 291 (0x123), region = 28 }
  0x36   : > { %517 = dma.hbm_to_vmem [thread:$0]  (!%p849_p2), %s181_s24, 512, %s183_s29, %s169_s30, %s951_s4, %s951_s4, %s722_s28  }
  0x3a   : > { %685 = dma.done.wait (%p777_p1), [#allocation4], 256  }
  0x3b   : > { %687 = vsyncadd (%p777_p1), [#allocation4], 4294967040  ;;  %s867_s27 = sand.u32 1, %s702_s10  }
  0x3c   : > { %s474_s7 = sshll.u32 %s867_s27, 5  ;;  %s201_s8 = scalar_lea.sflag [#allocation7], %s867_s27 }
  0x3d   : > { %s204_s22 = scalar_lea.vmem [#allocation6], %s474_s7 }
  0x3e   : > { %689 = dma.done.wait (%p787_p4), %s201_s8, 512  }
  0x3f   : > { %691 = vsyncadd (%p787_p4), %s201_s8, 4294966784  ;;  %vm232_vm0 = vcmask 261120   ;;  %v724_v0 = vmov 0.0   ;;  %v242_v1 = vld [vmem:[%s204_s22 + $0x18] sm:$0xff]  ;;  %v241_v2 = vld [vmem:[%s204_s22 + $0x10] sm:$0xff]  ;;  %s475_s17 = sshll.u32 %s867_s27, 4 }
  0x40   : > { %234 = vst.msk [vmem:[#allocation2 + $0x8] sm:$0xff] %vm232_vm0, %v724_v0  ;;  %233 = vst.msk [vmem:[#allocation2] sm:$0xff] %vm232_vm0, %v724_v0  ;;  %491 = vmatprep.subr.mxu0 %v242_v1  ;;  %v237_v3 = vld [vmem:[#allocation3] sm:$0xff]  ;;  %v240_v4 = vld [vmem:[%s204_s22 + $0x8] sm:$0xff]  ;;  %s484_s19 = sshll.u32 %s710_s12, 8  ;;  %s224_s21 = scalar_lea.vmem [#allocation8], %s475_s17 }
  0x41   : > { %492 = vmatpush3.msra.mxu0 %v242_v1  ;;  %499 = vmatprep.mubr.msk.f32.mxu0 %vm232_vm0, %v237_v3  ;;  %v239_v5 = vld [vmem:[%s204_s22] sm:$0xff]  ;;  %v238_v6 = vld [vmem:[#allocation3 + $0x8] sm:$0xff]  ;;  %s353_s28 = sshll.u32 %s224_s21, 4  ;;  %s886_s26 = scalar_lea.hbm %s939_s2, %s484_s19  ;;  %s888_s28 = int_to_ptr.vmem [resolvable:$true] %s353_s28 }
  0x42   : > { %493 = vmatprep.subr.mxu0 %v241_v2  ;;  %s337_s29 = scalar_lea.sflag [#allocation5], %s867_s27  ;;  %s634_s12 = scalar_lea.vmem %s888_s28, 256 }
  0x43   : > { %494 = vmatpush3.msra.mxu0 %v241_v2  ;;  %p635_p1 = scmp.ne.s32.totalorder %s888_s28, %s634_s12  ;;  %p952_p4 = scmp.ne.s32.totalorder %s949_s5, 0 }
  0x44   : > { %495 = vmatprep.subr.mxu0 %v240_v4  ;;  %s725_s18 = smov [#allocation8]  }
  0x45   : > { %496 = vmatpush3.msra.mxu0 %v240_v4  ;;  %p636_p8 = pnand %p635_p1, %p952_p4  ;;  %s638_s30 = sshll.u32 %s725_s18, 4  ;;  %s639_s30 = int_to_ptr.vmem [resolvable:$false] %s638_s30 }
  0x46   : > { %497 = vmatprep.subr.mxu0 %v239_v5  ;;  %s640_s6 = scalar_lea.vmem %s639_s30, 512  ;;  %p641_p13 = scmp.lt.s32.totalorder %s888_s28, %s639_s30 }
  0x47   : > { %498 = vmatpush3.msra.mxu0 %v239_v5  ;;  %v236_v7 = vld [vmem:[#allocation2 + $0x8] sm:$0xff]  ;;  %v235_v9 = vld [vmem:[#allocation2] sm:$0xff]  ;;  %p637_p12 = pneg %p636_p8  ;;  %p642_p0 = scmp.lt.s32.totalorder %s640_s6, %s634_s12 }
  0x48   : > { %500 = vmatmul.mubr.msk.f32.vlgmr.msra.gmra.mxu0 %vm232_vm0, %v238_v6 }
  0x49   : > { %p643_p2 = por %p642_p0, %p641_p13 }
  0x4b   : > { %p644_p3 = pnand %p643_p2, %p637_p12 }
 0x108   : > { %v501_v8 = vpop.f32.mrf.mxu0 }
 0x109   : > { %v326_v10 = vadd.f32 %v501_v8, %v236_v7 }
 0x10a   : > { %v316_v11 = vpop.f32.mrf.mxu0 }
 0x10b   : > { %328 = vst.msk [vmem:[#allocation2 + $0x8] sm:$0xff] %vm232_vm0, %v326_v10  ;;  %v325_v12 = vadd.f32 %v316_v11, %v235_v9 }
 0x10d   : > { %327 = vst.msk [vmem:[#allocation2] sm:$0xff] %vm232_vm0, %v325_v12 }
 0x112   : > { %v333_v13 = vld [vmem:[#allocation2 + $0x8] sm:$0xff] }
 0x113   : > { %335 = vst.msk [vmem:[%s224_s21 + $0x8] sm:$0xff] %vm232_vm0, %v333_v13 }
 0x114   : > { %v332_v14 = vld [vmem:[#allocation2] sm:$0xff] }
 0x115   : > { %334 = vst.msk [vmem:[%s224_s21] sm:$0xff] %vm232_vm0, %v332_v14 }
 0x116   : > { %647 = shalt.err (!%p644_p3)
}
 0x117   : > { %s648_s3 = scalar_lea.hbm %s886_s26, 256  ;;  %s652_s7 = scalar_lea.hbm %s939_s2, 768 }
 0x118   : > { %p649_p5 = scmp.ne.s32.totalorder %s886_s26, %s648_s3  ;;  %p653_p9 = scmp.lt.s32.totalorder %s886_s26, %s939_s2 }
 0x119   : > { %p654_p11 = scmp.lt.s32.totalorder %s652_s7, %s648_s3 }
 0x11a   : > { %p650_p7 = pnand %p649_p5, %p952_p4 }
 0x11b   : > { %p655_p10 = por %p654_p11, %p653_p9 }
 0x11c   : > { %p651_p6 = pneg %p650_p7 }
 0x11e   : > { %p656_p1 = pnand %p655_p10, %p651_p6 }
 0x120   : > { %659 = shalt.err (!%p656_p1)
}
 0x121   : > { %s726_s17 = smov 128   ;;  %s727_s19 = smov 8  }
 0x122   : > { %508 = dma.vmem_to_hbm [thread:$0]  (%p952_p4), %s888_s28, 256, %s886_s26, %s337_s29, %s726_s17, %s726_s17, %s727_s19  }
 0x123 PF: > { %p525_p8 = scmp.ge.s32.totalorder %s718_s14, 2  ;;  %s368_s21 = sand.u32 1, %s698_s9  }
 0x124   : > { %p953_p12 = scmp.ne.s32.totalorder %s945_s20, 0  ;;  %s369_s23 = scalar_lea.sflag [#allocation5], %s368_s21 }
 0x126   : > { %p519_p13 = pnand %p525_p8, %p953_p12 }
 0x128   : > { %p520_p0 = pneg %p519_p13 }
 0x12a   : > { %693 = dma.done.wait (%p520_p0), %s369_s23, 256  }
 0x12b   : > { %695 = vsyncadd (%p520_p0), %s369_s23, 4294967040  ;;  %s19_s14 = sadd.s32 1, %s718_s14   ;;  %s954_s9 = smov %s702_s10 }
 0x12c   : > { %p16_p2 = scmp.ge.s32.totalorder %s19_s14, 5   ;;  %s955_s10 = smov %s706_s11 }
 0x12d   : > { %s956_s11 = smov %s841_s15  ;;  %s957_s12 = smov %s714_s13 }
 0x12e   : > { %s958_s13 = smov %s960_s25  ;;  %18 = sbr.rel (!%p16_p2) target bundleno = 7 (0x7), region = 87 }
 0x133   :  { %374 = vsyncpa [#allocation4], 1 }
 0x134   :  { %376 = vsyncpa [#allocation4 + $0x1], 1 }
 0x135   :  { %377 = vsyncpa [#allocation7], 1 }
 0x136   :  { %379 = vsyncpa [#allocation7 + $0x1], 1 }
 0x137   :  { %380 = vsyncpa [#allocation5], 1 }
 0x138   :  { %382 = vsyncpa [#allocation5 + $0x1], 1 }

</bundles_post_ra>
